<compile_context>
chip_gen: v7x
topology: tpu7x:2x2x1
jax: 0.10.0
libtpu: 0.0.40
codegen_flags: <defaults>
</compile_context>

<pallas_src>
from functools import partial

import jax
import jax.numpy as jnp
from jax import lax
from jax.experimental import pallas as pl
from jax.experimental.pallas import tpu as pltpu


def lstm_tagger_kernel(
    sent_ref,   # SMEM (T,)  int32 word indices (scalar-prefetched)
    emb_ref,    # VMEM (V, E) embedding table
    slab_ref,   # VMEM (E+2H+2, 4H) packed params: [W_ih; W_hh; b; W_tag(pad); b_tag(pad)]
    out_ref,    # VMEM (T, K) log-softmax tag scores
):
    T = out_ref.shape[0]
    K = out_ref.shape[1]
    E = emb_ref.shape[1]
    G = slab_ref.shape[1]          # 4H
    H = G // 4

    # ---- in-kernel embedding gather: T dynamic single-row reads ----
    embeds = jnp.concatenate(
        [emb_ref[pl.ds(sent_ref[t], 1), :] for t in range(T)], axis=0)   # (T, E)

    # ---- static views into the packed parameter slab ----
    wih = slab_ref[0:E, :]                                               # (E, G)
    whh_rows = [slab_ref[pl.ds(E + j, 1), :] for j in range(H)]          # H x (1, G)
    bias = slab_ref[pl.ds(E + H, 1), :]                                  # (1, G)
    wtag = slab_ref[E + H + 1:E + 2 * H + 1, :][:, 0:K]                  # (H, K)
    btag = slab_ref[pl.ds(E + 2 * H + 1, 1), :][:, 0:K]                  # (1, K)

    # ---- hoisted input projection: one (T,E)@(E,4H) MXU matmul ----
    gx = jnp.dot(embeds, wih, preferred_element_type=jnp.float32) + bias  # (T, G)

    # sigmoid(x) = 0.5*tanh(0.5*x) + 0.5  -> single tanh over the fused gate
    # vector; g-gate lanes keep scale 1 / offset 0 (plain tanh).
    lane = lax.broadcasted_iota(jnp.int32, (1, G), 1)
    g_lanes = (lane >= 2 * H) & (lane < 3 * H)
    pre = jnp.where(g_lanes, 1.0, 0.5).astype(jnp.float32)               # (1, G)
    add = jnp.where(g_lanes, 0.0, 0.5).astype(jnp.float32)               # (1, G)

    # ---- fully unrolled recurrence, vreg-resident state (no VMEM scratch) ----
    h = jnp.zeros((1, H), jnp.float32)
    c = jnp.zeros((1, H), jnp.float32)
    h_list = []
    for t in range(T):
        gates = gx[t:t + 1, :]                                           # (1, G)
        if t > 0:
            # h @ W_hh as H broadcast FMAs on the VPU (no MXU on the serial chain).
            for j in range(H):
                gates = gates + h[:, j:j + 1] * whh_rows[j]
        act = jnp.tanh(gates * pre) * pre + add                          # one EUP tanh
        i_g = act[:, 0 * H:1 * H]
        f_g = act[:, 1 * H:2 * H]
        g_g = act[:, 2 * H:3 * H]
        o_g = act[:, 3 * H:4 * H]
        c = f_g * c + i_g * g_g
        h = o_g * jnp.tanh(c)
        h_list.append(h)

    hs = jnp.concatenate(h_list, axis=0)                                 # (T, H)

    # ---- hidden2tag + log_softmax(dim=1) ----
    tag_space = jnp.dot(hs, wtag, preferred_element_type=jnp.float32) + btag  # (T, K)
    m = jnp.max(tag_space, axis=1, keepdims=True)
    shifted = tag_space - m
    lse = jnp.log(jnp.sum(jnp.exp(shifted), axis=1, keepdims=True))
    out_ref[...] = shifted - lse


def pack_params(params):
    """One-time packing of PyTorch-layout weights into a single VMEM slab."""
    E = params["w_ih"].shape[1]
    H = params["w_hh"].shape[1]
    K = params["w_tag"].shape[0]
    G = 4 * H
    assert K <= G, "tagset wider than the fused gate lane width; widen the slab"
    wtag_pad = jnp.zeros((H, G), jnp.float32).at[:, :K].set(params["w_tag"].T)
    btag_pad = jnp.zeros((1, G), jnp.float32).at[:, :K].set(
        params["b_tag"].reshape(1, K))
    slab = jnp.concatenate(
        [
            params["w_ih"].T,                                    # (E, G)
            params["w_hh"].T,                                    # (H, G)
            (params["b_ih"] + params["b_hh"]).reshape(1, G),     # (1, G)
            wtag_pad,                                            # (H, G)
            btag_pad,                                            # (1, G)
        ],
        axis=0,
    )                                                            # (E+2H+2, G)
    return {"emb_table": params["emb_table"], "slab": slab}


@partial(jax.jit, static_argnames=("tagset_size",))
def lstm_tagger_forward(sentence, packed, *, tagset_size):
    """sentence: (T,) int32 word indices. Returns tag_scores (T, K)."""
    T = sentence.shape[0]
    K = tagset_size
    vmem = pl.BlockSpec(memory_space=pltpu.MemorySpace.VMEM)
    return pl.pallas_call(
        lstm_tagger_kernel,
        out_shape=jax.ShapeDtypeStruct((T, K), jnp.float32),
        grid_spec=pltpu.PrefetchScalarGridSpec(
            num_scalar_prefetch=1,           # sentence -> SMEM
            grid=(),                         # single-shot, fully resident
            in_specs=[vmem, vmem],           # emb_table, param slab
            out_specs=vmem,
        ),
    )(sentence, packed["emb_table"], packed["slab"])
    # NOTE: for real workloads, batch multiple length-padded sentences per call
    # (parallel leading grid axis) to use v7x's second TensorCore; kept single-
    # sentence here to preserve the original module's forward semantics.


def init_params(key, vocab_size, embedding_dim, hidden_dim, tagset_size):
    ks = jax.random.split(key, 7)
    u = lambda k, shape, scale: jax.random.uniform(
        k, shape, jnp.float32, minval=-scale, maxval=scale)
    s = 1.0 / (hidden_dim ** 0.5)
    return {
        "emb_table": jax.random.normal(ks[0], (vocab_size, embedding_dim), jnp.float32),
        "w_ih": u(ks[1], (4 * hidden_dim, embedding_dim), s),
        "w_hh": u(ks[2], (4 * hidden_dim, hidden_dim), s),
        "b_ih": u(ks[3], (4 * hidden_dim,), s),
        "b_hh": u(ks[4], (4 * hidden_dim,), s),
        "w_tag": u(ks[5], (tagset_size, hidden_dim), s),
        "b_tag": u(ks[6], (tagset_size,), s),
    }


def reference_forward(sentence, params):
    """Pure-JAX reference matching torch.nn.LSTM semantics (batch=1)."""
    embeds = params["emb_table"][sentence]
    H = params["w_hh"].shape[1]
    w_ih, w_hh = params["w_ih"], params["w_hh"]
    b = params["b_ih"] + params["b_hh"]

    def step(carry, x_t):
        h, c = carry
        gates = x_t @ w_ih.T + h @ w_hh.T + b
        i = jax.nn.sigmoid(gates[0:H])
        f = jax.nn.sigmoid(gates[H:2 * H])
        g = jnp.tanh(gates[2 * H:3 * H])
        o = jax.nn.sigmoid(gates[3 * H:4 * H])
        c_new = f * c + i * g
        h_new = o * jnp.tanh(c_new)
        return (h_new, c_new), h_new

    h0 = jnp.zeros((H,), jnp.float32)
    _, hs = lax.scan(step, (h0, h0), embeds)
    tag_space = hs @ params["w_tag"].T + params["b_tag"]
    return jax.nn.log_softmax(tag_space, axis=1)


if __name__ == "__main__":
    EMBEDDING_DIM = 10
    HIDDEN_DIM = 3

    training_data = [
        ("The cat ate the fish".split(), ["DET", "NN", "V", "DET", "NN"]),
        ("They read that book".split(), ["NN", "V", "DET", "NN"]),
    ]
    word_to_ix = {}
    for sent, _ in training_data:
        for w in sent:
            if w not in word_to_ix:
                word_to_ix[w] = len(word_to_ix)
    tag_to_ix = {"DET": 0, "NN": 1, "V": 2}

    params = init_params(jax.random.PRNGKey(0), len(word_to_ix),
                         EMBEDDING_DIM, HIDDEN_DIM, len(tag_to_ix))
    packed = pack_params(params)   # pack once, outside the jit'd forward

    # prepare_sequence(training_data[0][0], word_to_ix)
    sentence = jnp.array([word_to_ix[w] for w in training_data[0][0]], jnp.int32)  # (T,)

    tag_scores = lstm_tagger_forward(sentence, packed, tagset_size=len(tag_to_ix))
    tag_scores = jax.block_until_ready(tag_scores)

    ref = reference_forward(sentence, params)
    assert tag_scores.shape == (sentence.shape[0], len(tag_to_ix))
    assert jnp.allclose(tag_scores, ref, atol=1e-5, rtol=1e-5), "mismatch vs reference"

    print("KERNEL_OK")
</pallas_src>

<mosaic_0001>
module attributes {stable_mosaic.version = 11 : i64} {
  func.func @lstm_tagger_kernel(%arg0: memref<5xi32, #tpu.memory_space<smem>>, %arg1: memref<9x10xf32, #tpu.memory_space<vmem>>, %arg2: memref<18x12xf32, #tpu.memory_space<vmem>>, %arg3: memref<5x3xf32, #tpu.memory_space<vmem>>) attributes {dimension_semantics = [], scalar_prefetch = 1 : i64, scratch_operands = 0 : i64, tpu.core_type = #tpu.core_type<tc>} {
    %c0 = arith.constant 0 : index
    %0 = memref.load %arg0[%c0] : memref<5xi32, #tpu.memory_space<smem>>
    %1 = arith.index_cast %0 : i32 to index
    %c0_0 = arith.constant 0 : index
    %2 = vector.load %arg1[%1, %c0_0] : memref<9x10xf32, #tpu.memory_space<vmem>>, vector<1x10xf32>
    %c1 = arith.constant 1 : index
    %3 = memref.load %arg0[%c1] : memref<5xi32, #tpu.memory_space<smem>>
    %4 = arith.index_cast %3 : i32 to index
    %c0_1 = arith.constant 0 : index
    %5 = vector.load %arg1[%4, %c0_1] : memref<9x10xf32, #tpu.memory_space<vmem>>, vector<1x10xf32>
    %c2 = arith.constant 2 : index
    %6 = memref.load %arg0[%c2] : memref<5xi32, #tpu.memory_space<smem>>
    %7 = arith.index_cast %6 : i32 to index
    %c0_2 = arith.constant 0 : index
    %8 = vector.load %arg1[%7, %c0_2] : memref<9x10xf32, #tpu.memory_space<vmem>>, vector<1x10xf32>
    %c3 = arith.constant 3 : index
    %9 = memref.load %arg0[%c3] : memref<5xi32, #tpu.memory_space<smem>>
    %10 = arith.index_cast %9 : i32 to index
    %c0_3 = arith.constant 0 : index
    %11 = vector.load %arg1[%10, %c0_3] : memref<9x10xf32, #tpu.memory_space<vmem>>, vector<1x10xf32>
    %c4 = arith.constant 4 : index
    %12 = memref.load %arg0[%c4] : memref<5xi32, #tpu.memory_space<smem>>
    %13 = arith.index_cast %12 : i32 to index
    %c0_4 = arith.constant 0 : index
    %14 = vector.load %arg1[%13, %c0_4] : memref<9x10xf32, #tpu.memory_space<vmem>>, vector<1x10xf32>
    %15 = tpu.concatenate %2, %5, %8, %11, %14 in 0 : vector<1x10xf32>, vector<1x10xf32>, vector<1x10xf32>, vector<1x10xf32>, vector<1x10xf32> -> vector<5x10xf32>
    %c0_5 = arith.constant 0 : index
    %c0_6 = arith.constant 0 : index
    %16 = vector.load %arg2[%c0_5, %c0_6] : memref<18x12xf32, #tpu.memory_space<vmem>>, vector<10x12xf32>
    %c10 = arith.constant 10 : index
    %c0_7 = arith.constant 0 : index
    %17 = vector.load %arg2[%c10, %c0_7] : memref<18x12xf32, #tpu.memory_space<vmem>>, vector<1x12xf32>
    %c11 = arith.constant 11 : index
    %c0_8 = arith.constant 0 : index
    %18 = vector.load %arg2[%c11, %c0_8] : memref<18x12xf32, #tpu.memory_space<vmem>>, vector<1x12xf32>
    %c12 = arith.constant 12 : index
    %c0_9 = arith.constant 0 : index
    %19 = vector.load %arg2[%c12, %c0_9] : memref<18x12xf32, #tpu.memory_space<vmem>>, vector<1x12xf32>
    %c13 = arith.constant 13 : index
    %c0_10 = arith.constant 0 : index
    %20 = vector.load %arg2[%c13, %c0_10] : memref<18x12xf32, #tpu.memory_space<vmem>>, vector<1x12xf32>
    %c14 = arith.constant 14 : index
    %c0_11 = arith.constant 0 : index
    %21 = vector.load %arg2[%c14, %c0_11] : memref<18x12xf32, #tpu.memory_space<vmem>>, vector<3x12xf32>
    %22 = vector.extract_strided_slice %21 {offsets = [0, 0], sizes = [3, 3], strides = [1, 1]} : vector<3x12xf32> to vector<3x3xf32>
    %c17 = arith.constant 17 : index
    %c0_12 = arith.constant 0 : index
    %23 = vector.load %arg2[%c17, %c0_12] : memref<18x12xf32, #tpu.memory_space<vmem>>, vector<1x12xf32>
    %24 = vector.extract_strided_slice %23 {offsets = [0, 0], sizes = [1, 3], strides = [1, 1]} : vector<1x12xf32> to vector<1x3xf32>
    %cst = arith.constant dense<0.000000e+00> : vector<5x12xf32>
    %25 = tpu.matmul %15, %16, %cst {dimension_numbers = #tpu.dot_dimension_numbers<[1], [0], [0], [1], [0, 0, 1, 1], [], []>} : vector<5x10xf32>, vector<10x12xf32>, vector<5x12xf32> -> vector<5x12xf32>
    %26 = vector.broadcast %20 : vector<1x12xf32> to vector<5x12xf32>
    %27 = arith.addf %25, %26 : vector<5x12xf32>
    %28 = tpu.iota {dimensions = array<i32: 1>} : vector<1x12xi32>
    %c6_i32 = arith.constant 6 : i32
    %29 = vector.broadcast %c6_i32 : i32 to vector<1x12xi32>
    %30 = arith.cmpi sge, %28, %29 : vector<1x12xi32>
    %c9_i32 = arith.constant 9 : i32
    %31 = vector.broadcast %c9_i32 : i32 to vector<1x12xi32>
    %32 = arith.cmpi slt, %28, %31 : vector<1x12xi32>
    %33 = arith.andi %30, %32 : vector<1x12xi1>
    %cst_13 = arith.constant 1.000000e+00 : f32
    %cst_14 = arith.constant 5.000000e-01 : f32
    %34 = vector.broadcast %cst_13 : f32 to vector<1x12xf32>
    %35 = vector.broadcast %cst_14 : f32 to vector<1x12xf32>
    %36 = arith.select %33, %34, %35 : vector<1x12xi1>, vector<1x12xf32>
    %cst_15 = arith.constant 0.000000e+00 : f32
    %cst_16 = arith.constant 5.000000e-01 : f32
    %37 = vector.broadcast %cst_15 : f32 to vector<1x12xf32>
    %38 = vector.broadcast %cst_16 : f32 to vector<1x12xf32>
    %39 = arith.select %33, %37, %38 : vector<1x12xi1>, vector<1x12xf32>
    %cst_17 = arith.constant 0.000000e+00 : f32
    %40 = vector.broadcast %cst_17 : f32 to vector<1x3xf32>
    %41 = vector.extract_strided_slice %27 {offsets = [0, 0], sizes = [1, 12], strides = [1, 1]} : vector<5x12xf32> to vector<1x12xf32>
    %42 = arith.mulf %41, %36 : vector<1x12xf32>
    %43 = math.tanh %42 : vector<1x12xf32>
    %44 = arith.mulf %43, %36 : vector<1x12xf32>
    %45 = arith.addf %44, %39 : vector<1x12xf32>
    %46 = vector.extract_strided_slice %45 {offsets = [0, 0], sizes = [1, 3], strides = [1, 1]} : vector<1x12xf32> to vector<1x3xf32>
    %47 = vector.extract_strided_slice %45 {offsets = [0, 3], sizes = [1, 3], strides = [1, 1]} : vector<1x12xf32> to vector<1x3xf32>
    %48 = vector.extract_strided_slice %45 {offsets = [0, 6], sizes = [1, 3], strides = [1, 1]} : vector<1x12xf32> to vector<1x3xf32>
    %49 = vector.extract_strided_slice %45 {offsets = [0, 9], sizes = [1, 3], strides = [1, 1]} : vector<1x12xf32> to vector<1x3xf32>
    %50 = arith.mulf %47, %40 : vector<1x3xf32>
    %51 = arith.mulf %46, %48 : vector<1x3xf32>
    %52 = arith.addf %50, %51 : vector<1x3xf32>
    %53 = math.tanh %52 : vector<1x3xf32>
    %54 = arith.mulf %49, %53 : vector<1x3xf32>
    %55 = vector.extract_strided_slice %27 {offsets = [1, 0], sizes = [1, 12], strides = [1, 1]} : vector<5x12xf32> to vector<1x12xf32>
    %56 = vector.extract_strided_slice %54 {offsets = [0, 0], sizes = [1, 1], strides = [1, 1]} : vector<1x3xf32> to vector<1x1xf32>
    %57 = vector.broadcast %56 : vector<1x1xf32> to vector<1x12xf32>
    %58 = arith.mulf %57, %17 : vector<1x12xf32>
    %59 = arith.addf %55, %58 : vector<1x12xf32>
    %60 = vector.extract_strided_slice %54 {offsets = [0, 1], sizes = [1, 1], strides = [1, 1]} : vector<1x3xf32> to vector<1x1xf32>
    %61 = vector.broadcast %60 : vector<1x1xf32> to vector<1x12xf32>
    %62 = arith.mulf %61, %18 : vector<1x12xf32>
    %63 = arith.addf %59, %62 : vector<1x12xf32>
    %64 = vector.extract_strided_slice %54 {offsets = [0, 2], sizes = [1, 1], strides = [1, 1]} : vector<1x3xf32> to vector<1x1xf32>
    %65 = vector.broadcast %64 : vector<1x1xf32> to vector<1x12xf32>
    %66 = arith.mulf %65, %19 : vector<1x12xf32>
    %67 = arith.addf %63, %66 : vector<1x12xf32>
    %68 = arith.mulf %67, %36 : vector<1x12xf32>
    %69 = math.tanh %68 : vector<1x12xf32>
    %70 = arith.mulf %69, %36 : vector<1x12xf32>
    %71 = arith.addf %70, %39 : vector<1x12xf32>
    %72 = vector.extract_strided_slice %71 {offsets = [0, 0], sizes = [1, 3], strides = [1, 1]} : vector<1x12xf32> to vector<1x3xf32>
    %73 = vector.extract_strided_slice %71 {offsets = [0, 3], sizes = [1, 3], strides = [1, 1]} : vector<1x12xf32> to vector<1x3xf32>
    %74 = vector.extract_strided_slice %71 {offsets = [0, 6], sizes = [1, 3], strides = [1, 1]} : vector<1x12xf32> to vector<1x3xf32>
    %75 = vector.extract_strided_slice %71 {offsets = [0, 9], sizes = [1, 3], strides = [1, 1]} : vector<1x12xf32> to vector<1x3xf32>
    %76 = arith.mulf %73, %52 : vector<1x3xf32>
    %77 = arith.mulf %72, %74 : vector<1x3xf32>
    %78 = arith.addf %76, %77 : vector<1x3xf32>
    %79 = math.tanh %78 : vector<1x3xf32>
    %80 = arith.mulf %75, %79 : vector<1x3xf32>
    %81 = vector.extract_strided_slice %27 {offsets = [2, 0], sizes = [1, 12], strides = [1, 1]} : vector<5x12xf32> to vector<1x12xf32>
    %82 = vector.extract_strided_slice %80 {offsets = [0, 0], sizes = [1, 1], strides = [1, 1]} : vector<1x3xf32> to vector<1x1xf32>
    %83 = vector.broadcast %82 : vector<1x1xf32> to vector<1x12xf32>
    %84 = arith.mulf %83, %17 : vector<1x12xf32>
    %85 = arith.addf %81, %84 : vector<1x12xf32>
    %86 = vector.extract_strided_slice %80 {offsets = [0, 1], sizes = [1, 1], strides = [1, 1]} : vector<1x3xf32> to vector<1x1xf32>
    %87 = vector.broadcast %86 : vector<1x1xf32> to vector<1x12xf32>
    %88 = arith.mulf %87, %18 : vector<1x12xf32>
    %89 = arith.addf %85, %88 : vector<1x12xf32>
    %90 = vector.extract_strided_slice %80 {offsets = [0, 2], sizes = [1, 1], strides = [1, 1]} : vector<1x3xf32> to vector<1x1xf32>
    %91 = vector.broadcast %90 : vector<1x1xf32> to vector<1x12xf32>
    %92 = arith.mulf %91, %19 : vector<1x12xf32>
    %93 = arith.addf %89, %92 : vector<1x12xf32>
    %94 = arith.mulf %93, %36 : vector<1x12xf32>
    %95 = math.tanh %94 : vector<1x12xf32>
    %96 = arith.mulf %95, %36 : vector<1x12xf32>
    %97 = arith.addf %96, %39 : vector<1x12xf32>
    %98 = vector.extract_strided_slice %97 {offsets = [0, 0], sizes = [1, 3], strides = [1, 1]} : vector<1x12xf32> to vector<1x3xf32>
    %99 = vector.extract_strided_slice %97 {offsets = [0, 3], sizes = [1, 3], strides = [1, 1]} : vector<1x12xf32> to vector<1x3xf32>
    %100 = vector.extract_strided_slice %97 {offsets = [0, 6], sizes = [1, 3], strides = [1, 1]} : vector<1x12xf32> to vector<1x3xf32>
    %101 = vector.extract_strided_slice %97 {offsets = [0, 9], sizes = [1, 3], strides = [1, 1]} : vector<1x12xf32> to vector<1x3xf32>
    %102 = arith.mulf %99, %78 : vector<1x3xf32>
    %103 = arith.mulf %98, %100 : vector<1x3xf32>
    %104 = arith.addf %102, %103 : vector<1x3xf32>
    %105 = math.tanh %104 : vector<1x3xf32>
    %106 = arith.mulf %101, %105 : vector<1x3xf32>
    %107 = vector.extract_strided_slice %27 {offsets = [3, 0], sizes = [1, 12], strides = [1, 1]} : vector<5x12xf32> to vector<1x12xf32>
    %108 = vector.extract_strided_slice %106 {offsets = [0, 0], sizes = [1, 1], strides = [1, 1]} : vector<1x3xf32> to vector<1x1xf32>
    %109 = vector.broadcast %108 : vector<1x1xf32> to vector<1x12xf32>
    %110 = arith.mulf %109, %17 : vector<1x12xf32>
    %111 = arith.addf %107, %110 : vector<1x12xf32>
    %112 = vector.extract_strided_slice %106 {offsets = [0, 1], sizes = [1, 1], strides = [1, 1]} : vector<1x3xf32> to vector<1x1xf32>
    %113 = vector.broadcast %112 : vector<1x1xf32> to vector<1x12xf32>
    %114 = arith.mulf %113, %18 : vector<1x12xf32>
    %115 = arith.addf %111, %114 : vector<1x12xf32>
    %116 = vector.extract_strided_slice %106 {offsets = [0, 2], sizes = [1, 1], strides = [1, 1]} : vector<1x3xf32> to vector<1x1xf32>
    %117 = vector.broadcast %116 : vector<1x1xf32> to vector<1x12xf32>
    %118 = arith.mulf %117, %19 : vector<1x12xf32>
    %119 = arith.addf %115, %118 : vector<1x12xf32>
    %120 = arith.mulf %119, %36 : vector<1x12xf32>
    %121 = math.tanh %120 : vector<1x12xf32>
    %122 = arith.mulf %121, %36 : vector<1x12xf32>
    %123 = arith.addf %122, %39 : vector<1x12xf32>
    %124 = vector.extract_strided_slice %123 {offsets = [0, 0], sizes = [1, 3], strides = [1, 1]} : vector<1x12xf32> to vector<1x3xf32>
    %125 = vector.extract_strided_slice %123 {offsets = [0, 3], sizes = [1, 3], strides = [1, 1]} : vector<1x12xf32> to vector<1x3xf32>
    %126 = vector.extract_strided_slice %123 {offsets = [0, 6], sizes = [1, 3], strides = [1, 1]} : vector<1x12xf32> to vector<1x3xf32>
    %127 = vector.extract_strided_slice %123 {offsets = [0, 9], sizes = [1, 3], strides = [1, 1]} : vector<1x12xf32> to vector<1x3xf32>
    %128 = arith.mulf %125, %104 : vector<1x3xf32>
    %129 = arith.mulf %124, %126 : vector<1x3xf32>
    %130 = arith.addf %128, %129 : vector<1x3xf32>
    %131 = math.tanh %130 : vector<1x3xf32>
    %132 = arith.mulf %127, %131 : vector<1x3xf32>
    %133 = vector.extract_strided_slice %27 {offsets = [4, 0], sizes = [1, 12], strides = [1, 1]} : vector<5x12xf32> to vector<1x12xf32>
    %134 = vector.extract_strided_slice %132 {offsets = [0, 0], sizes = [1, 1], strides = [1, 1]} : vector<1x3xf32> to vector<1x1xf32>
    %135 = vector.broadcast %134 : vector<1x1xf32> to vector<1x12xf32>
    %136 = arith.mulf %135, %17 : vector<1x12xf32>
    %137 = arith.addf %133, %136 : vector<1x12xf32>
    %138 = vector.extract_strided_slice %132 {offsets = [0, 1], sizes = [1, 1], strides = [1, 1]} : vector<1x3xf32> to vector<1x1xf32>
    %139 = vector.broadcast %138 : vector<1x1xf32> to vector<1x12xf32>
    %140 = arith.mulf %139, %18 : vector<1x12xf32>
    %141 = arith.addf %137, %140 : vector<1x12xf32>
    %142 = vector.extract_strided_slice %132 {offsets = [0, 2], sizes = [1, 1], strides = [1, 1]} : vector<1x3xf32> to vector<1x1xf32>
    %143 = vector.broadcast %142 : vector<1x1xf32> to vector<1x12xf32>
    %144 = arith.mulf %143, %19 : vector<1x12xf32>
    %145 = arith.addf %141, %144 : vector<1x12xf32>
    %146 = arith.mulf %145, %36 : vector<1x12xf32>
    %147 = math.tanh %146 : vector<1x12xf32>
    %148 = arith.mulf %147, %36 : vector<1x12xf32>
    %149 = arith.addf %148, %39 : vector<1x12xf32>
    %150 = vector.extract_strided_slice %149 {offsets = [0, 0], sizes = [1, 3], strides = [1, 1]} : vector<1x12xf32> to vector<1x3xf32>
    %151 = vector.extract_strided_slice %149 {offsets = [0, 3], sizes = [1, 3], strides = [1, 1]} : vector<1x12xf32> to vector<1x3xf32>
    %152 = vector.extract_strided_slice %149 {offsets = [0, 6], sizes = [1, 3], strides = [1, 1]} : vector<1x12xf32> to vector<1x3xf32>
    %153 = vector.extract_strided_slice %149 {offsets = [0, 9], sizes = [1, 3], strides = [1, 1]} : vector<1x12xf32> to vector<1x3xf32>
    %154 = arith.mulf %151, %130 : vector<1x3xf32>
    %155 = arith.mulf %150, %152 : vector<1x3xf32>
    %156 = arith.addf %154, %155 : vector<1x3xf32>
    %157 = math.tanh %156 : vector<1x3xf32>
    %158 = arith.mulf %153, %157 : vector<1x3xf32>
    %159 = tpu.concatenate %54, %80, %106, %132, %158 in 0 : vector<1x3xf32>, vector<1x3xf32>, vector<1x3xf32>, vector<1x3xf32>, vector<1x3xf32> -> vector<5x3xf32>
    %cst_18 = arith.constant dense<0.000000e+00> : vector<5x3xf32>
    %160 = tpu.matmul %159, %22, %cst_18 {dimension_numbers = #tpu.dot_dimension_numbers<[1], [0], [0], [1], [0, 0, 1, 1], [], []>} : vector<5x3xf32>, vector<3x3xf32>, vector<5x3xf32> -> vector<5x3xf32>
    %161 = vector.broadcast %24 : vector<1x3xf32> to vector<5x3xf32>
    %162 = arith.addf %160, %161 : vector<5x3xf32>
    %cst_19 = arith.constant dense<0xFF800000> : vector<5xf32>
    %163 = vector.multi_reduction <maximumf>, %162, %cst_19 [1] : vector<5x3xf32> to vector<5xf32>
    %164 = vector.shape_cast %163 : vector<5xf32> to vector<5x1xf32>
    %165 = vector.broadcast %164 : vector<5x1xf32> to vector<5x3xf32>
    %166 = arith.subf %162, %165 : vector<5x3xf32>
    %167 = math.exp %166 : vector<5x3xf32>
    %cst_20 = arith.constant dense<0.000000e+00> : vector<5xf32>
    %168 = vector.multi_reduction <add>, %167, %cst_20 [1] : vector<5x3xf32> to vector<5xf32>
    %169 = vector.shape_cast %168 : vector<5xf32> to vector<5x1xf32>
    %170 = math.log %169 : vector<5x1xf32>
    %171 = vector.broadcast %170 : vector<5x1xf32> to vector<5x3xf32>
    %172 = arith.subf %166, %171 : vector<5x3xf32>
    %c0_21 = arith.constant 0 : index
    %c0_22 = arith.constant 0 : index
    %173 = vector.load %arg3[%c0_21, %c0_22] : memref<5x3xf32, #tpu.memory_space<vmem>>, vector<5x3xf32>
    tpu.vector_store %arg3[%c0_21, %c0_22], %172 {strides = array<i32>} : memref<5x3xf32, #tpu.memory_space<vmem>>, vector<5x3xf32>,
    return
  }
}

</mosaic_0001>

<bundles_post_ra>
// kernel: lstm_tagger_forward.1
= control target key start
LH: loop header
LB: loop body
LE: loop exit
PB: predicated region body
PF: predicated region fallthrough
CT: control target
= control target key end

     0   :  { %s773_s0 = inlined_call_operand.vmem [shape: s32[5], index: 0, kind: input, shape index: {}]   ;;  %s774_s1 = inlined_call_operand.vmem [shape: f32[9,10], index: 1, kind: input, shape index: {}]   ;;  %s775_s2 = inlined_call_operand.vmem [shape: f32[18,12], index: 2, kind: input, shape index: {}]   ;;  %s776_s3 = inlined_call_operand.vmem [shape: f32[5,3], index: 3, kind: output, shape index: {}]  }
   0x1   :  { %s8_s14 = sshll.u32 %s773_s0, 4  ;;  %s9_s14 = int_to_ptr.vmem [resolvable:$true] %s8_s14 }
   0x2   :  { %s590_s15 = scalar_lea.vmem %s9_s14, 16  ;;  %p595_p1 = scmp.lt.s32.totalorder %s9_s14, %s9_s14 }
   0x3   :  { %p591_p0 = scmp.ne.s32.totalorder %s9_s14, %s590_s15  ;;  %p596_p2 = scmp.lt.s32.totalorder %s590_s15, %s590_s15 }
   0x5   :  { %p597_p3 = por %p596_p2, %p595_p1 }
   0x7   :  { %p598_p4 = pnand %p597_p3, %p591_p0 }
   0x9   :  { %601 = shalt.err (!%p598_p4)  }
   0xa   :  { %s604_s16 = smov [#allocation3]  }
   0xb   :  { %11 = dma.vmem_to_smem %s9_s14, 16, %s604_s16, [#allocation2] }
   0xc   :  { %602 = dma.done.wait [#allocation2], 16 }
   0xd   :  { %603 = vsyncadd [#allocation2], 4294967280 }
   0xe   :  { %13 = sfence }
   0xf   :  { %s18_s17 = sld [smem:[#allocation3]]  ;;  %s509_s18 = sld [smem:[#allocation3 + $0x1]]  ;;  %v605_v0 = vmov 0.0|0.0   ;;  %vm47_vm0 = vcmask 1041408   ;;  %v53_v1 = vld [vmem:[%s775_s2] sm:$0xff]  ;;  %vm606_vm1 = vmmov 1   ;;  %v142_v18 = vlaneseq }
  0x10   :  { %536 = vmatprep.subr.bf16.mxu0 %v605_v0  ;;  %s510_s19 = sld [smem:[#allocation3 + $0x2]]  ;;  %v54_v2 = vld [vmem:[%s775_s2 + $0x8] sm:$0x3]  ;;  %s511_s23 = sld [smem:[#allocation3 + $0x3]]  ;;  %vm538_vm2 = vmpackc.low %vm47_vm0, %vm606_vm1  ;;  %vm607_vm3 = vmmov 0   ;;  %v608_v4 = vmov 0.0  }
  0x11   :  { %v537_v3 = vpack.c.bf16 %v54_v2, %v53_v1  ;;  %528 = vmatprep.mubr.msk.f32.mxu0 %vm607_vm3, %v608_v4  ;;  %s512_s24 = sld [smem:[#allocation3 + $0x4]]  ;;  %531 = vmatprep.subr.mxu1 %v608_v4  ;;  %vm45_vm4 = vcmask 1040384   ;;  %vm49_vm5 = vcmask 1042432   ;;  %vm51_vm6 = vcmask 1043456   ;;  %v513_v20 = vld [vmem:[%s775_s2 + $0xd] ss:$0 sm:$0xff] }
  0x12   :  { %533 = vmatprep.mubr.msk.f32.mxu1 %vm607_vm3, %v608_v4  ;;  %vm65_vm7 = vcmask 80896   ;;  %v143_v19 = vand.u32 127, %v142_v18  ;;  %v609_v22 = vmov 0.5   ;;  %s610_s14 = smov 122   ;;  %s611_s15 = smov 3   ;;  %v612_v36 = vmov 10  }
  0x13   :  { %539 = vmatpush3.bf16.msk.msra.mxu0 %vm538_vm2, %v537_v3  ;;  %554 = vset.pattern.permute.xlu0 %v612_v36  ;;  %v613_v37 = vmov 9   ;;  %s614_s16 = smov 6   ;;  %v615_v41 = vmov 11   ;;  %v695_v42 = vld [vmem:[%s775_s2 + $0xb] sm:$0x1]  ;;  %vm410_vm11 = vcmask 23552  }
  0x14   :  { %vm144_vm8 = vcmp.ge.s32.totalorder %v143_v19, 6  ;;  %vm145_vm9 = vcmp.lt.s32.totalorder %v143_v19, 9  ;;  %553 = vset.pattern.permute.xlu1 %v613_v37  ;;  %v700_v43 = vld [vmem:[%s775_s2 + $0xa] sm:$0x1]  ;;  %v707_v49 = vld [vmem:[%s775_s2 + $0xc] sm:$0x1] }
  0x15   :  { %s19_s27 = scalar_lea.vmem %s774_s1, %s18_s17  ;;  %s22_s30 = scalar_lea.vmem %s774_s1, %s509_s18  ;;  %vm146_vm10 = vmand %vm144_vm8, %vm145_vm9  ;;  %vm486_vm12 = vcmask 20480  }
  0x16   :  { %v20_v5 = vld [vmem:[%s19_s27] sm:$0x1]  ;;  %s25_s6 = scalar_lea.vmem %s774_s1, %s510_s19  ;;  %s28_s9 = scalar_lea.vmem %s774_s1, %s511_s23  ;;  %v669_v23 = vsel %vm146_vm10, 1.0, %v609_v22  ;;  %v675_v28 = vsel %vm146_vm10, 0.0, %v609_v22 }
  0x17   :  { %v23_v6 = vld [vmem:[%s22_s30] sm:$0x1]  ;;  %s31_s12 = scalar_lea.vmem %s774_s1, %s512_s24  ;;  %s616_s24 = smov 119  }
  0x18   :  { %v26_v7 = vld [vmem:[%s25_s6] sm:$0x1]  ;;  %v34_v8 = vrot.slane %v23_v6, 7  ;;  %v240_v6 = vrot.slane %v695_v42, 7 }
  0x19   :  { %v37_v9 = vrot.slane %v26_v7, 6  ;;  %v29_v10 = vld [vmem:[%s28_s9] sm:$0x1]  ;;  %v228_v7 = vrot.slane %v700_v43, 7 }
  0x1a   :  { %v46_v11 = vsel %vm45_vm4, %v20_v5, %v34_v8  ;;  %v32_v12 = vld [vmem:[%s31_s12] sm:$0x1]  ;;  %v40_v13 = vrot.slane %v29_v10, 5 }
  0x1b   :  { %v48_v14 = vsel %vm47_vm0, %v46_v11, %v37_v9  ;;  %v43_v15 = vrot.slane %v32_v12, 4  ;;  %v252_v12 = vrot.slane %v707_v49, 7 }
  0x1c   :  { %v50_v16 = vsel %vm49_vm5, %v48_v14, %v40_v13 }
  0x1d   :  { %v52_v17 = vsel %vm51_vm6, %v50_v16, %v43_v15 }
  0x1e   :  { %529 = vmatmul.mubr.msk.f32.vlgmr.msra.gmra.mrb[0].mxu0 %vm65_vm7, %v52_v17 }
  0xf1   :  { %v138_v21 = vpop.f32.mrb[0].mxu0 }
  0xf2   :  { %v671_v24 = vadd.f32 %v513_v20, %v138_v21  ;;  %v530_v25 = vpop.f32.mrb[1].mxu0 }
  0xf4   :  { %v149_v26 = vmul.f32 %v669_v23, %v671_v24 }
  0xf6   :  { %566 = vtanh.f32 %v149_v26 }
 0x100   :  { %v567_v27 = vpop.eup %566 }
 0x101   :  { %v151_v29 = vmul.f32 %v567_v27, %v669_v23 }
 0x103   :  { %v152_v30 = vadd.f32 %v151_v29, %v675_v28 }
 0x105   :  { %155 = vrot.lane.b32.xlu0 %v152_v30, %s610_s14  ;;  %v153_v33 = vmul.f32 0.0, %v152_v30 }
 0x177   :  { %v156_v31 = vpop.permute.xlu0 %155 }
 0x178   :  { %v158_v32 = vmul.f32 %v156_v31, %v152_v30 }
 0x17a   :  { %160 = vrot.lane.b32.xlu0 %v158_v32, %s611_s15 }
 0x1ec   :  { %v161_v34 = vpop.permute.xlu0 %160 }
 0x1ed   :  { %v163_v35 = vadd.f32 %v161_v34, %v153_v33 }
 0x1ef   :  { %568 = vtanh.f32 %v163_v35  ;;  %v203_v63 = vrot.slane %v163_v35, 7 }
 0x1f9   :  { %v569_v38 = vpop.eup %568 }
 0x1fa   :  { %166 = vrot.lane.b32.xlu1 %v569_v38, %s614_s16 }
 0x26c   :  { %v167_v39 = vpop.permute.xlu1 %166 }
 0x26d   :  { %v684_v40 = vmul.f32 %v167_v39, %v152_v30 }
 0x26f   :  { %181 = vperm.xlu0 %554, %v684_v40   ;;  %172 = vperm.xlu1 %553, %v684_v40  }
 0x273   :  { %555 = vset.pattern.permute.xlu1 %v615_v41  ;;  %556 = vset.pattern.permute.xlu0 %v613_v37 }
 0x274   :  { %190 = vperm.xlu1 %555, %v684_v40  }
 0x278   :  { %557 = vset.pattern.permute.xlu1 %v612_v36 }
 0x2ee   :  { %v182_v44 = vpop.permute.xlu0 %181  ;;  %v173_v45 = vpop.permute.xlu1 %172 }
 0x2ef   :  { %v184_v46 = vmul.f32 %v182_v44, %v695_v42  ;;  %v175_v47 = vmul.f32 %v173_v45, %v700_v43  ;;  %v299_v45 = vrot.slane %v695_v42, 6 }
 0x2f1   :  { %v177_v48 = vrot.slane %v175_v47, 7  ;;  %v186_v50 = vrot.slane %v184_v46, 7  ;;  %v288_v46 = vrot.slane %v700_v43, 6 }
 0x2f3   :  { %v179_v51 = vadd.f32 %v177_v48, %v671_v24  ;;  %v191_v52 = vpop.permute.xlu1 %190 }
 0x2f4   :  { %v193_v53 = vmul.f32 %v191_v52, %v707_v49 }
 0x2f5   :  { %v188_v54 = vadd.f32 %v186_v50, %v179_v51 }
 0x2f6   :  { %v195_v55 = vrot.slane %v193_v53, 7 }
 0x2f8   :  { %v197_v56 = vadd.f32 %v195_v55, %v188_v54 }
 0x2fa   :  { %v198_v57 = vmul.f32 %v197_v56, %v669_v23 }
 0x2fc   :  { %570 = vtanh.f32 %v198_v57 }
 0x306   :  { %v571_v58 = vpop.eup %570 }
 0x307   :  { %v200_v59 = vmul.f32 %v571_v58, %v669_v23 }
 0x309   :  { %v201_v60 = vadd.f32 %v200_v59, %v675_v28 }
 0x30b   :  { %207 = vrot.lane.b32.xlu1 %v201_v60, %s610_s14  ;;  %v205_v0 = vmul.f32 %v203_v63, %v201_v60 }
 0x37d   :  { %v208_v61 = vpop.permute.xlu1 %207 }
 0x37e   :  { %v210_v62 = vmul.f32 %v208_v61, %v201_v60 }
 0x380   :  { %212 = vrot.lane.b32.xlu0 %v210_v62, %s611_s15 }
 0x3f2   :  { %v213_v1 = vpop.permute.xlu0 %212 }
 0x3f3   :  { %v215_v2 = vadd.f32 %v213_v1, %v205_v0 }
 0x3f5   :  { %572 = vtanh.f32 %v215_v2  ;;  %v264_v30 = vrot.slane %v215_v2, 7 }
 0x3ff   :  { %v573_v3 = vpop.eup %572 }
 0x400   :  { %218 = vrot.lane.b32.xlu1 %v573_v3, %s614_s16 }
 0x472   :  { %v219_v4 = vpop.permute.xlu1 %218 }
 0x473   :  { %v221_v5 = vmul.f32 %v219_v4, %v201_v60 }
 0x475   :  { %236 = vperm.xlu1 %557, %v221_v5   ;;  %224 = vperm.xlu0 %556, %v221_v5   ;;  %v399_v39 = vsel %vm45_vm4, %v684_v40, %v221_v5  ;;  %v310_v40 = vrot.slane %v707_v49, 6 }
 0x479   :  { %558 = vset.pattern.permute.xlu1 %v615_v41  ;;  %560 = vset.pattern.permute.xlu0 %v612_v36 }
 0x47a   :  { %248 = vperm.xlu1 %558, %v221_v5  }
 0x47e   :  { %559 = vset.pattern.permute.xlu1 %v613_v37 }
 0x4f4   :  { %v237_v8 = vpop.permute.xlu1 %236  ;;  %v225_v9 = vpop.permute.xlu0 %224 }
 0x4f5   :  { %v242_v10 = vmul.f32 %v240_v6, %v237_v8  ;;  %v230_v11 = vmul.f32 %v228_v7, %v225_v9  ;;  %v357_v8 = vrot.slane %v695_v42, 5  ;;  %v346_v9 = vrot.slane %v700_v43, 5 }
 0x4f7   :  { %v232_v13 = vrot.slane %v230_v11, 7  ;;  %v244_v14 = vrot.slane %v242_v10, 7 }
 0x4f9   :  { %v234_v15 = vadd.f32 %v232_v13, %v671_v24  ;;  %v249_v16 = vpop.permute.xlu1 %248 }
 0x4fa   :  { %v254_v17 = vmul.f32 %v252_v12, %v249_v16 }
 0x4fb   :  { %v246_v18 = vadd.f32 %v244_v14, %v234_v15  ;;  %v368_v14 = vrot.slane %v707_v49, 5 }
 0x4fc   :  { %v256_v19 = vrot.slane %v254_v17, 7 }
 0x4fe   :  { %v258_v20 = vadd.f32 %v256_v19, %v246_v18 }
 0x500   :  { %v259_v21 = vmul.f32 %v258_v20, %v669_v23 }
 0x502   :  { %574 = vtanh.f32 %v259_v21 }
 0x50c   :  { %v575_v22 = vpop.eup %574 }
 0x50d   :  { %v261_v25 = vmul.f32 %v575_v22, %v669_v23 }
 0x50f   :  { %v262_v26 = vadd.f32 %v261_v25, %v675_v28 }
 0x511   :  { %268 = vrot.lane.b32.xlu0 %v262_v26, %s610_s14  ;;  %v266_v31 = vmul.f32 %v264_v30, %v262_v26 }
 0x583   :  { %v269_v27 = vpop.permute.xlu0 %268 }
 0x584   :  { %v271_v29 = vmul.f32 %v269_v27, %v262_v26 }
 0x586   :  { %273 = vrot.lane.b32.xlu1 %v271_v29, %s611_s15 }
 0x5f8   :  { %v274_v32 = vpop.permute.xlu1 %273 }
 0x5f9   :  { %v276_v33 = vadd.f32 %v274_v32, %v266_v31  ;;  %v59_v31 = vld [vmem:[%s775_s2 + $0xe] sm:$0x7] }
 0x5fa   :  { %532 = vmatpush3.msk.msra.mxu1 %vm49_vm5, %v59_v31 }
 0x5fb   :  { %576 = vtanh.f32 %v276_v33  ;;  %v322_v0 = vrot.slane %v276_v33, 7 }
 0x605   :  { %v577_v34 = vpop.eup %576 }
 0x606   :  { %279 = vrot.lane.b32.xlu0 %v577_v34, %s614_s16 }
 0x678   :  { %v280_v35 = vpop.permute.xlu0 %279 }
 0x679   :  { %v282_v38 = vmul.f32 %v280_v35, %v262_v26  ;;  %v516_v35 = vld [vmem:[%s775_s2 + $0x11] ss:$0 sm:$0xff] }
 0x67b   :  { %296 = vperm.xlu0 %560, %v282_v38   ;;  %285 = vperm.xlu1 %559, %v282_v38   ;;  %v400_v44 = vsel %vm47_vm0, %v399_v39, %v282_v38 }
 0x67f   :  { %561 = vset.pattern.permute.xlu1 %v615_v41  ;;  %562 = vset.pattern.permute.xlu0 %v613_v37 }
 0x680   :  { %307 = vperm.xlu1 %561, %v282_v38  }
 0x684   :  { %563 = vset.pattern.permute.xlu1 %v612_v36 }
 0x6fa   :  { %v297_v47 = vpop.permute.xlu0 %296  ;;  %v286_v48 = vpop.permute.xlu1 %285 }
 0x6fb   :  { %v301_v50 = vmul.f32 %v299_v45, %v297_v47  ;;  %v290_v51 = vmul.f32 %v288_v46, %v286_v48 }
 0x6fd   :  { %v292_v52 = vrot.slane %v290_v51, 7  ;;  %v303_v53 = vrot.slane %v301_v50, 7 }
 0x6ff   :  { %v294_v54 = vadd.f32 %v292_v52, %v671_v24  ;;  %v308_v55 = vpop.permute.xlu1 %307 }
 0x700   :  { %v312_v56 = vmul.f32 %v310_v40, %v308_v55 }
 0x701   :  { %v305_v37 = vadd.f32 %v303_v53, %v294_v54 }
 0x702   :  { %v314_v57 = vrot.slane %v312_v56, 7 }
 0x704   :  { %v316_v58 = vadd.f32 %v314_v57, %v305_v37 }
 0x706   :  { %v317_v36 = vmul.f32 %v316_v58, %v669_v23 }
 0x708   :  { %578 = vtanh.f32 %v317_v36 }
 0x712   :  { %v579_v59 = vpop.eup %578 }
 0x713   :  { %v319_v60 = vmul.f32 %v579_v59, %v669_v23 }
 0x715   :  { %v320_v61 = vadd.f32 %v319_v60, %v675_v28 }
 0x717   :  { %326 = vrot.lane.b32.xlu1 %v320_v61, %s610_s14  ;;  %v324_v1 = vmul.f32 %v322_v0, %v320_v61 }
 0x789   :  { %v327_v62 = vpop.permute.xlu1 %326 }
 0x78a   :  { %v329_v63 = vmul.f32 %v327_v62, %v320_v61 }
 0x78c   :  { %331 = vrot.lane.b32.xlu0 %v329_v63, %s611_s15 }
 0x7fe   :  { %v332_v2 = vpop.permute.xlu0 %331 }
 0x7ff   :  { %v334_v3 = vadd.f32 %v332_v2, %v324_v1 }
 0x801   :  { %580 = vtanh.f32 %v334_v3 }
 0x80b   :  { %v581_v4 = vpop.eup %580 }
 0x80c   :  { %337 = vrot.lane.b32.xlu1 %v581_v4, %s614_s16 }
 0x87e   :  { %v338_v5 = vpop.permute.xlu1 %337 }
 0x87f   :  { %v340_v6 = vmul.f32 %v338_v5, %v320_v61 }
 0x881   :  { %354 = vperm.xlu1 %563, %v340_v6   ;;  %343 = vperm.xlu0 %562, %v340_v6   ;;  %v401_v7 = vsel %vm49_vm5, %v400_v44, %v340_v6 }
 0x885   :  { %564 = vset.pattern.permute.xlu1 %v615_v41  ;;  %565 = vset.pattern.permute.xlu0 %v615_v41 }
 0x886   :  { %365 = vperm.xlu1 %564, %v340_v6  }
 0x900   :  { %v355_v10 = vpop.permute.xlu1 %354  ;;  %v344_v11 = vpop.permute.xlu0 %343 }
 0x901   :  { %v359_v12 = vmul.f32 %v357_v8, %v355_v10  ;;  %v348_v13 = vmul.f32 %v346_v9, %v344_v11 }
 0x903   :  { %v350_v15 = vrot.slane %v348_v13, 7  ;;  %v361_v16 = vrot.slane %v359_v12, 7 }
 0x905   :  { %v352_v17 = vadd.f32 %v350_v15, %v671_v24  ;;  %v366_v18 = vpop.permute.xlu1 %365  ;;  %v380_v24 = vrot.slane %v334_v3, 7 }
 0x906   :  { %v370_v19 = vmul.f32 %v368_v14, %v366_v18 }
 0x907   :  { %v363_v20 = vadd.f32 %v361_v16, %v352_v17 }
 0x908   :  { %v372_v21 = vrot.slane %v370_v19, 7 }
 0x90a   :  { %v374_v41 = vadd.f32 %v372_v21, %v363_v20 }
 0x90c   :  { %v375_v22 = vmul.f32 %v374_v41, %v669_v23 }
 0x90e   :  { %582 = vtanh.f32 %v375_v22 }
 0x918   :  { %v583_v42 = vpop.eup %582 }
 0x919   :  { %v377_v43 = vmul.f32 %v583_v42, %v669_v23 }
 0x91b   :  { %v378_v25 = vadd.f32 %v377_v43, %v675_v28 }
 0x91d   :  { %384 = vrot.lane.b32.xlu0 %v378_v25, %s610_s14  ;;  %v382_v27 = vmul.f32 %v380_v24, %v378_v25 }
 0x98f   :  { %v385_v49 = vpop.permute.xlu0 %384 }
 0x990   :  { %v387_v26 = vmul.f32 %v385_v49, %v378_v25 }
 0x992   :  { %389 = vrot.lane.b32.xlu1 %v387_v26, %s611_s15 }
 0xa04   :  { %v390_v29 = vpop.permute.xlu1 %389 }
 0xa05   :  { %v392_v30 = vadd.f32 %v390_v29, %v382_v27 }
 0xa07   :  { %584 = vtanh.f32 %v392_v30 }
 0xa11   :  { %v585_v23 = vpop.eup %584 }
 0xa12   :  { %395 = vrot.lane.b32.xlu0 %v585_v23, %s614_s16 }
 0xa84   :  { %v396_v28 = vpop.permute.xlu0 %395 }
 0xa85   :  { %v398_v32 = vmul.f32 %v396_v28, %v378_v25 }
 0xa87   :  { %v402_v33 = vsel %vm51_vm6, %v401_v7, %v398_v32 }
 0xa88   :  { %408 = vrot.lane.b32.xlu1 %v402_v33, %s616_s24 }
 0xafa   :  { %v409_v34 = vpop.permute.xlu1 %408 }
 0xafb   :  { %534 = vmatmul.mubr.msk.f32.vlgmr.msra.gmra.mrb[0].mxu1 %vm410_vm11, %v409_v34 }
 0xbce   :  { %v482_v38 = vpop.f32.mrb[0].mxu1 }
 0xbcf   :  { %v483_v39 = vadd.f32 %v516_v35, %v482_v38  ;;  %v535_v44 = vpop.f32.mrb[1].mxu1 }
 0xbd1   :  { %v487_v45 = vsel %vm486_vm12, %v483_v39, -inf }
 0xbd2   :  { %488 = vmax.xlane.f32.xlu0 %v487_v45 }
 0xc5f   :  { %v489_v46 = vpop.xlane.xlu0 %488 }
 0xc60   :  { %v490_v47 = vsub.f32 %v483_v39, %v489_v46 }
 0xc62   :  { %v491_v48 = vmul.f32 1.442695, %v490_v47 }
 0xc64   :  { %586 = vpow2.f32 %v491_v48 }
 0xc6e   :  { %v587_v50 = vpop.eup %586 }
 0xc6f   :  { %v493_v51 = vsel %vm486_vm12, %v587_v50, 0.0 }
 0xc70   :  { %494 = vadd.xlane.f32.xlu1 %v493_v51 }
 0xcfd   :  { %v495_v40 = vpop.xlane.xlu1 %494 }
 0xcfe   :  { %588 = vlog2.f32 %v495_v40 }
 0xd08   :  { %v589_v52 = vpop.eup %588 }
 0xd09   :  { %v497_v53 = vmul.f32 0.6931472, %v589_v52 }
 0xd0b   :  { %v498_v54 = vsub.f32 %v490_v47, %v497_v53 }
 0xd0d   :  { %499 = vst.msk [vmem:[%s776_s3] sm:$0x1f] %vm486_vm12, %v498_v54 }

</bundles_post_ra>
